<compile_context>
chip_gen: v5e
topology: v5e:2x2
jax: 0.10.0
libtpu: 0.0.40
codegen_flags: <defaults>
</compile_context>

<pallas_src>
import jax
import jax.numpy as jnp
from jax import lax
from jax.experimental import pallas as pl
from jax.experimental.pallas import tpu as pltpu

EPS = 1e-5  # nn.InstanceNorm2d default eps


def _round_up(x, m):
    return -(-x // m) * m


def _make_kernel(H, W, Wp, HWo, C):
    inv_hw = 1.0 / float(H * W)

    def kernel(x_ref, w_ref, m_ref, o_ref, tap_ref):
        # x_ref:   (1, C, Lin)  f32  zero-padded, row-flattened input (one sample)
        # w_ref:   (C, 9*C)     bf16 conv weight, tap-major along contraction
        # m_ref:   (1, HWo)     f32  validity mask (1.0 where column is a real pixel)
        # o_ref:   (1, C, HWo)  f32  output (channel-major, HWo lane-dense)
        # tap_ref: (9*C, HWo)   bf16 VMEM scratch: sublane-stacked shifted views
        x_f32 = x_ref[0]                              # (C, Lin) f32
        x_bf = x_f32.astype(jnp.bfloat16)             # single cast pass for MXU operand

        # Stack the 9 shifted views (tap (dy,dx) -> lane offset dy*Wp+dx) so the
        # whole 3x3 conv is ONE matmul with contraction depth 9C.
        for t in range(9):
            dy, dx = t // 3, t % 3
            off = dy * Wp + dx
            tap_ref[t * C:(t + 1) * C, :] = x_bf[:, off:off + HWo]

        acc = jnp.dot(w_ref[...], tap_ref[...],
                      preferred_element_type=jnp.float32)        # (C, HWo) f32

        # Instance norm over valid spatial positions only; single masked pass.
        # Biased variance (E[x^2] - mean^2) matches InstanceNorm2d.
        mask = m_ref[...]                                        # (1, HWo)
        am = acc * mask
        mean = jnp.sum(am, axis=1, keepdims=True) * inv_hw
        var = jnp.sum(am * am, axis=1, keepdims=True) * inv_hw - mean * mean
        y = (acc - mean) * lax.rsqrt(var + EPS)

        # Residual: center tap (dy=1,dx=1) of the f32 padded slab is exactly x.
        res = x_f32[:, Wp + 1: Wp + 1 + HWo]
        o_ref[0] = (res + y).astype(o_ref.dtype)

    return kernel


def resnet_block_forward(x_nchw, weight):
    """out = x + InstanceNorm2d(Conv2d(x, 3x3, stride=1, pad=1, bias=False))."""
    N, C, H, W = x_nchw.shape
    Hp, Wp = H + 2, W + 2
    HWp = H * Wp                                   # valid rows x padded width
    HWo = _round_up(HWp, 128)                      # lane-dense compute/output width
    # Flat length needed: deepest read = (2*Wp + 2) + HWo; lane-align to 128.
    Lin = _round_up(max(Hp * Wp, 2 * Wp + 2 + HWo), 128)

    # --- glue: zero-pad spatially, row-flatten, keep f32 (single read of x) ---
    xpad = jnp.pad(x_nchw, ((0, 0), (0, 0), (1, 1), (1, 1)))     # (N, C, Hp, Wp)
    xflat = xpad.reshape(N, C, Hp * Wp)
    xflat = jnp.pad(xflat, ((0, 0), (0, 0), (0, Lin - Hp * Wp)))

    # (Cout, Cin, kh, kw) -> (Cout, kh, kw, Cin) -> (Cout, 9*Cin): tap-major
    # contraction index k = (kh*3 + kw)*Cin + cin, matching the tap stacking.
    w_mat = jnp.transpose(weight, (0, 2, 3, 1)).reshape(C, 9 * C).astype(jnp.bfloat16)

    # Validity mask over the lane-rounded flattened grid.
    p = jnp.arange(HWo, dtype=jnp.int32)
    mask = (((p % Wp) < W) & (p < HWp)).astype(jnp.float32).reshape(1, HWo)

    kernel = _make_kernel(H, W, Wp, HWo, C)

    # VMEM budget: double-buffered f32 input + f32 output, bf16 tap scratch,
    # weights, mask, and live f32 accumulator/intermediates.
    bytes_needed = (2 * C * Lin * 4            # input slab (x2 pipeline buffers)
                    + 2 * C * HWo * 4          # output (x2 pipeline buffers)
                    + 9 * C * HWo * 2          # tap scratch (bf16)
                    + 2 * 9 * C * C * 2        # weights
                    + 2 * HWo * 4              # mask
                    + 4 * C * HWo * 4)         # acc / am / y live f32 values
    try:
        cap = min(int(pltpu.get_tpu_info().vmem_capacity_bytes) * 3 // 4,
                  100 * 1024 * 1024)
    except Exception:
        cap = 64 * 1024 * 1024
    vmem_limit = int(min(max(2 * bytes_needed, 32 * 1024 * 1024), cap))

    out = pl.pallas_call(
        kernel,
        out_shape=jax.ShapeDtypeStruct((N, C, HWo), x_nchw.dtype),
        grid_spec=pltpu.PrefetchScalarGridSpec(
            num_scalar_prefetch=0,
            grid=(N,),
            in_specs=[
                pl.BlockSpec((1, C, Lin), lambda n: (n, 0, 0)),
                pl.BlockSpec((C, 9 * C), lambda n: (0, 0)),
                pl.BlockSpec((1, HWo), lambda n: (0, 0)),
            ],
            out_specs=pl.BlockSpec((1, C, HWo), lambda n: (n, 0, 0)),
            scratch_shapes=[pltpu.VMEM((9 * C, HWo), jnp.bfloat16)],
        ),
        compiler_params=pltpu.CompilerParams(
            dimension_semantics=("parallel",),
            vmem_limit_bytes=vmem_limit,
        ),
    )(xflat, w_mat, mask)

    # Output is already channel-major (NCHW); drop lane rounding + pad columns.
    return out[:, :, :HWp].reshape(N, C, H, Wp)[:, :, :, :W]


def _reference(x_nchw, weight):
    """Pure-JAX f32 reference of the same forward pass."""
    conv = lax.conv_general_dilated(
        x_nchw, weight, window_strides=(1, 1), padding=((1, 1), (1, 1)),
        dimension_numbers=("NCHW", "OIHW", "NCHW"))
    mean = jnp.mean(conv, axis=(2, 3), keepdims=True)
    var = jnp.mean((conv - mean) ** 2, axis=(2, 3), keepdims=True)
    return x_nchw + (conv - mean) * lax.rsqrt(var + EPS)


if __name__ == "__main__":
    key = jax.random.PRNGKey(0)
    kx, kw = jax.random.split(key)

    N, C, H, W = 2, 4, 16, 16          # conv_dim = C = 4
    x = jax.random.normal(kx, (N, C, H, W), jnp.float32)

    # Deterministic conv weight (shape of nn.Conv2d(C, C, 3, bias=False).weight).
    fan_in = C * 3 * 3
    weight = jax.random.uniform(
        kw, (C, C, 3, 3), jnp.float32, minval=-1.0, maxval=1.0) / jnp.sqrt(fan_in)

    out = jax.jit(resnet_block_forward)(x, weight)
    out = jax.block_until_ready(out)
    assert out.shape == (N, C, H, W)

    # Tight check vs a reference with the same numerics: bf16-rounded conv
    # operands, f32 normalization, exact f32 residual.
    xb = x.astype(jnp.bfloat16).astype(jnp.float32)
    wb = weight.astype(jnp.bfloat16).astype(jnp.float32)
    conv_bf = lax.conv_general_dilated(
        xb, wb, window_strides=(1, 1), padding=((1, 1), (1, 1)),
        dimension_numbers=("NCHW", "OIHW", "NCHW"))
    mean = jnp.mean(conv_bf, axis=(2, 3), keepdims=True)
    var = jnp.mean((conv_bf - mean) ** 2, axis=(2, 3), keepdims=True)
    ref_tight = x + (conv_bf - mean) * lax.rsqrt(var + EPS)
    assert jnp.allclose(out, ref_tight, atol=5e-3, rtol=5e-3), \
        "Pallas output mismatch vs bf16-conv / f32-residual reference"

    # Loose sanity check vs the exact f32 forward (bf16 matmul operands -> ~1e-2 noise).
    ref = _reference(x, weight)
    assert float(jnp.max(jnp.abs(out - ref))) < 8e-2, \
        "Pallas output mismatch vs f32 reference"

    print("KERNEL_OK")
</pallas_src>

<mosaic_0001>
module attributes {stable_mosaic.version = 11 : i64} {
  func.func @kernel(%arg0: i32, %arg1: memref<1x4x512xf32, #tpu.memory_space<vmem>>, %arg2: memref<4x36xbf16, #tpu.memory_space<vmem>>, %arg3: memref<1x384xf32, #tpu.memory_space<vmem>>, %arg4: memref<1x4x384xf32, #tpu.memory_space<vmem>>, %arg5: memref<36x384xbf16, #tpu.memory_space<vmem>>) attributes {dimension_semantics = [#tpu.dimension_semantics<parallel>], iteration_bounds = array<i64: 2>, scalar_prefetch = 0 : i64, scratch_operands = 1 : i64, tpu.core_type = #tpu.core_type<tc>, window_params = [{transform_indices = @transform_0, window_bounds = array<i64: 1, 4, 512>}, {pipeline_mode = #tpu.pipeline_mode<synchronous>, transform_indices = @transform_1, window_bounds = array<i64: 4, 36>}, {pipeline_mode = #tpu.pipeline_mode<synchronous>, transform_indices = @transform_2, window_bounds = array<i64: 1, 384>}, {transform_indices = @transform_3, window_bounds = array<i64: 1, 4, 384>}]} {
    %c0 = arith.constant 0 : index
    %c0_0 = arith.constant 0 : index
    %c0_1 = arith.constant 0 : index
    %0 = vector.load %arg1[%c0, %c0_0, %c0_1] : memref<1x4x512xf32, #tpu.memory_space<vmem>>, vector<1x4x512xf32>
    %1 = vector.shape_cast %0 : vector<1x4x512xf32> to vector<4x512xf32>
    %2 = arith.truncf %1 : vector<4x512xf32> to vector<4x512xbf16>
    %3 = vector.extract_strided_slice %2 {offsets = [0, 0], sizes = [4, 384], strides = [1, 1]} : vector<4x512xbf16> to vector<4x384xbf16>
    %c0_2 = arith.constant 0 : index
    %c0_3 = arith.constant 0 : index
    %4 = vector.load %arg5[%c0_2, %c0_3] : memref<36x384xbf16, #tpu.memory_space<vmem>>, vector<4x384xbf16>
    tpu.vector_store %arg5[%c0_2, %c0_3], %3 {strides = array<i32>} : memref<36x384xbf16, #tpu.memory_space<vmem>>, vector<4x384xbf16>,
    %5 = vector.extract_strided_slice %2 {offsets = [0, 1], sizes = [4, 384], strides = [1, 1]} : vector<4x512xbf16> to vector<4x384xbf16>
    %c4 = arith.constant 4 : index
    %c0_4 = arith.constant 0 : index
    %6 = vector.load %arg5[%c4, %c0_4] : memref<36x384xbf16, #tpu.memory_space<vmem>>, vector<4x384xbf16>
    tpu.vector_store %arg5[%c4, %c0_4], %5 {strides = array<i32>} : memref<36x384xbf16, #tpu.memory_space<vmem>>, vector<4x384xbf16>,
    %7 = vector.extract_strided_slice %2 {offsets = [0, 2], sizes = [4, 384], strides = [1, 1]} : vector<4x512xbf16> to vector<4x384xbf16>
    %c8 = arith.constant 8 : index
    %c0_5 = arith.constant 0 : index
    %8 = vector.load %arg5[%c8, %c0_5] : memref<36x384xbf16, #tpu.memory_space<vmem>>, vector<4x384xbf16>
    tpu.vector_store %arg5[%c8, %c0_5], %7 {strides = array<i32>} : memref<36x384xbf16, #tpu.memory_space<vmem>>, vector<4x384xbf16>,
    %9 = vector.extract_strided_slice %2 {offsets = [0, 18], sizes = [4, 384], strides = [1, 1]} : vector<4x512xbf16> to vector<4x384xbf16>
    %c12 = arith.constant 12 : index
    %c0_6 = arith.constant 0 : index
    %10 = vector.load %arg5[%c12, %c0_6] : memref<36x384xbf16, #tpu.memory_space<vmem>>, vector<4x384xbf16>
    tpu.vector_store %arg5[%c12, %c0_6], %9 {strides = array<i32>} : memref<36x384xbf16, #tpu.memory_space<vmem>>, vector<4x384xbf16>,
    %11 = vector.extract_strided_slice %2 {offsets = [0, 19], sizes = [4, 384], strides = [1, 1]} : vector<4x512xbf16> to vector<4x384xbf16>
    %c16 = arith.constant 16 : index
    %c0_7 = arith.constant 0 : index
    %12 = vector.load %arg5[%c16, %c0_7] : memref<36x384xbf16, #tpu.memory_space<vmem>>, vector<4x384xbf16>
    tpu.vector_store %arg5[%c16, %c0_7], %11 {strides = array<i32>} : memref<36x384xbf16, #tpu.memory_space<vmem>>, vector<4x384xbf16>,
    %13 = vector.extract_strided_slice %2 {offsets = [0, 20], sizes = [4, 384], strides = [1, 1]} : vector<4x512xbf16> to vector<4x384xbf16>
    %c20 = arith.constant 20 : index
    %c0_8 = arith.constant 0 : index
    %14 = vector.load %arg5[%c20, %c0_8] : memref<36x384xbf16, #tpu.memory_space<vmem>>, vector<4x384xbf16>
    tpu.vector_store %arg5[%c20, %c0_8], %13 {strides = array<i32>} : memref<36x384xbf16, #tpu.memory_space<vmem>>, vector<4x384xbf16>,
    %15 = vector.extract_strided_slice %2 {offsets = [0, 36], sizes = [4, 384], strides = [1, 1]} : vector<4x512xbf16> to vector<4x384xbf16>
    %c24 = arith.constant 24 : index
    %c0_9 = arith.constant 0 : index
    %16 = vector.load %arg5[%c24, %c0_9] : memref<36x384xbf16, #tpu.memory_space<vmem>>, vector<4x384xbf16>
    tpu.vector_store %arg5[%c24, %c0_9], %15 {strides = array<i32>} : memref<36x384xbf16, #tpu.memory_space<vmem>>, vector<4x384xbf16>,
    %17 = vector.extract_strided_slice %2 {offsets = [0, 37], sizes = [4, 384], strides = [1, 1]} : vector<4x512xbf16> to vector<4x384xbf16>
    %c28 = arith.constant 28 : index
    %c0_10 = arith.constant 0 : index
    %18 = vector.load %arg5[%c28, %c0_10] : memref<36x384xbf16, #tpu.memory_space<vmem>>, vector<4x384xbf16>
    tpu.vector_store %arg5[%c28, %c0_10], %17 {strides = array<i32>} : memref<36x384xbf16, #tpu.memory_space<vmem>>, vector<4x384xbf16>,
    %19 = vector.extract_strided_slice %2 {offsets = [0, 38], sizes = [4, 384], strides = [1, 1]} : vector<4x512xbf16> to vector<4x384xbf16>
    %c32 = arith.constant 32 : index
    %c0_11 = arith.constant 0 : index
    %20 = vector.load %arg5[%c32, %c0_11] : memref<36x384xbf16, #tpu.memory_space<vmem>>, vector<4x384xbf16>
    tpu.vector_store %arg5[%c32, %c0_11], %19 {strides = array<i32>} : memref<36x384xbf16, #tpu.memory_space<vmem>>, vector<4x384xbf16>,
    %c0_12 = arith.constant 0 : index
    %c0_13 = arith.constant 0 : index
    %21 = vector.load %arg2[%c0_12, %c0_13] : memref<4x36xbf16, #tpu.memory_space<vmem>>, vector<4x36xbf16>
    %c0_14 = arith.constant 0 : index
    %c0_15 = arith.constant 0 : index
    %22 = vector.load %arg5[%c0_14, %c0_15] : memref<36x384xbf16, #tpu.memory_space<vmem>>, vector<36x384xbf16>
    %cst = arith.constant dense<0.000000e+00> : vector<4x384xf32>
    %23 = tpu.matmul %21, %22, %cst {dimension_numbers = #tpu.dot_dimension_numbers<[1], [0], [0], [1], [0, 0, 1, 1], [], []>} : vector<4x36xbf16>, vector<36x384xbf16>, vector<4x384xf32> -> vector<4x384xf32>
    %c0_16 = arith.constant 0 : index
    %c0_17 = arith.constant 0 : index
    %24 = vector.load %arg3[%c0_16, %c0_17] : memref<1x384xf32, #tpu.memory_space<vmem>>, vector<1x384xf32>
    %25 = vector.broadcast %24 : vector<1x384xf32> to vector<4x384xf32>
    %26 = arith.mulf %23, %25 : vector<4x384xf32>
    %cst_18 = arith.constant dense<0.000000e+00> : vector<4xf32>
    %27 = vector.multi_reduction <add>, %26, %cst_18 [1] : vector<4x384xf32> to vector<4xf32>
    %28 = vector.shape_cast %27 : vector<4xf32> to vector<4x1xf32>
    %cst_19 = arith.constant 3.906250e-03 : f32
    %29 = vector.broadcast %cst_19 : f32 to vector<4x1xf32>
    %30 = arith.mulf %28, %29 : vector<4x1xf32>
    %31 = arith.mulf %26, %26 : vector<4x384xf32>
    %cst_20 = arith.constant dense<0.000000e+00> : vector<4xf32>
    %32 = vector.multi_reduction <add>, %31, %cst_20 [1] : vector<4x384xf32> to vector<4xf32>
    %33 = vector.shape_cast %32 : vector<4xf32> to vector<4x1xf32>
    %cst_21 = arith.constant 3.906250e-03 : f32
    %34 = vector.broadcast %cst_21 : f32 to vector<4x1xf32>
    %35 = arith.mulf %33, %34 : vector<4x1xf32>
    %36 = arith.mulf %30, %30 : vector<4x1xf32>
    %37 = arith.subf %35, %36 : vector<4x1xf32>
    %38 = vector.broadcast %30 : vector<4x1xf32> to vector<4x384xf32>
    %39 = arith.subf %23, %38 : vector<4x384xf32>
    %cst_22 = arith.constant 9.99999974E-6 : f32
    %40 = vector.broadcast %cst_22 : f32 to vector<4x1xf32>
    %41 = arith.addf %37, %40 : vector<4x1xf32>
    %42 = math.rsqrt %41 : vector<4x1xf32>
    %43 = vector.broadcast %42 : vector<4x1xf32> to vector<4x384xf32>
    %44 = arith.mulf %39, %43 : vector<4x384xf32>
    %45 = vector.extract_strided_slice %1 {offsets = [0, 19], sizes = [4, 384], strides = [1, 1]} : vector<4x512xf32> to vector<4x384xf32>
    %46 = arith.addf %45, %44 : vector<4x384xf32>
    %c0_23 = arith.constant 0 : index
    %c0_24 = arith.constant 0 : index
    %c0_25 = arith.constant 0 : index
    %47 = vector.load %arg4[%c0_23, %c0_24, %c0_25] : memref<1x4x384xf32, #tpu.memory_space<vmem>>, vector<1x4x384xf32>
    %48 = vector.shape_cast %47 : vector<1x4x384xf32> to vector<4x384xf32>
    %49 = vector.shape_cast %46 : vector<4x384xf32> to vector<1x4x384xf32>
    tpu.vector_store %arg4[%c0_23, %c0_24, %c0_25], %49 {strides = array<i32>} : memref<1x4x384xf32, #tpu.memory_space<vmem>>, vector<1x4x384xf32>,
    return
  }
  func.func @transform_0(%arg0: i32) -> (i32, i32, i32) {
    %c0_i32 = arith.constant 0 : i32
    %c0_i32_0 = arith.constant 0 : i32
    %c0_i32_1 = arith.constant 0 : i32
    return %arg0, %c0_i32, %c0_i32_0 : i32, i32, i32
  }
  func.func @transform_1(%arg0: i32) -> (i32, i32) {
    %c0_i32 = arith.constant 0 : i32
    %c0_i32_0 = arith.constant 0 : i32
    %c0_i32_1 = arith.constant 0 : i32
    return %c0_i32, %c0_i32_0 : i32, i32
  }
  func.func @transform_2(%arg0: i32) -> (i32, i32) {
    %c0_i32 = arith.constant 0 : i32
    %c0_i32_0 = arith.constant 0 : i32
    %c0_i32_1 = arith.constant 0 : i32
    return %c0_i32, %c0_i32_0 : i32, i32
  }
  func.func @transform_3(%arg0: i32) -> (i32, i32, i32) {
    %c0_i32 = arith.constant 0 : i32
    %c0_i32_0 = arith.constant 0 : i32
    %c0_i32_1 = arith.constant 0 : i32
    return %arg0, %c0_i32, %c0_i32_0 : i32, i32, i32
  }
}

</mosaic_0001>

<bundles_post_ra>
// kernel: resnet_block_forward.1
= control target key start
LH: loop header
LB: loop body
LE: loop exit
PB: predicated region body
PF: predicated region fallthrough
CT: control target
= control target key end

     0   :  { %s653_s12 = smov 0   ;;  %s736_s0 = inlined_call_operand.vmem [shape: f32[2,4,512], index: 0, kind: input, shape index: {}]   ;;  %s737_s1 = inlined_call_operand.vmem [shape: bf16[4,36], index: 1, kind: input, shape index: {}]   ;;  %s738_s2 = inlined_call_operand.vmem [shape: f32[1,384], index: 2, kind: input, shape index: {}]   ;;  %s739_s3 = inlined_call_operand.vmem [shape: f32[2,4,384], index: 3, kind: output, shape index: {}]  }
   0x1 LB: > { %s552_s13 = sadd.s32 4294967295, %s622_s12   ;;  %p556_p0 = scmp.ge.s32.totalorder %s622_s12, 1  ;;  %s622_s12 = sphi %s653_s12, %s13_s12  }
   0x2   : > { %p137_p1 = scmp.lt.s32.totalorder %s622_s12, 3 }
   0x4   : > { %p138_p2 = pnand %p556_p0, %p137_p1 }
   0x5   : > { %p161_p3 = scmp.lt.s32.totalorder (!%p138_p2), %s552_s13, 1  ;;  %s624_s18 = smov (!%p138_p2), 109  }
   0x6   : > { %141 = sbr.rel (%p138_p2) target bundleno = 726 (0x2d6), region = 32  ;;  %s625_s19 = smov (!%p138_p2), 90  }
   0x7   : > { %s626_s20 = smov (!%p138_p2), 92   ;;  %s627_s21 = smov (!%p138_p2), 108  }
   0x8   : > { %s628_s22 = smov (!%p138_p2), 91   ;;  %s629_s23 = smov (!%p138_p2), 127  }
   0x9   : > { %s630_s24 = smov (!%p138_p2), 126   ;;  %s631_s25 = smov (!%p138_p2), 110  }
   0xa   : > { %s632_s30 = smov (!%p138_p2), 19  }
   0xb   : > { %s741_s13 = smov (!%p161_p3, %s552_s13), 1  ;;  %vm273_vm0 = vcmask 752640   ;;  %vm201_vm1 = vcmask 1043456   ;;  %vm287_vm2 = vcmask 744448   ;;  %vm245_vm3 = vcmask 891904  }
   0xc   : > { %s589_s14 = sshll.u32 %s741_s13, 4  ;;  %vm301_vm4 = vcmask 736256   ;;  %vm217_vm5 = vcmask 1031168   ;;  %vm259_vm6 = vcmask 883712   ;;  %vm363_vm7 = vcmask 1041408   ;;  %s596_s4 = smul.u32 12, %s741_s13 }
   0xd   : > { %s165_s17 = scalar_lea.vmem %s736_s0, %s589_s14  ;;  %vm203_vm8 = vcmask 1039360   ;;  %vm231_vm9 = vcmask 900096   ;;  %vm359_vm10 = vcmask 293888   ;;  %vm473_vm14 = vcmask 154624  }
   0xe   : > { %v667_v0 = vld [vmem:[%s165_s17 + $0x8] sm:$0xff]  ;;  %v669_v1 = vld [vmem:[%s165_s17] sm:$0xff]  ;;  %s170_s7 = scalar_lea.vmem %s739_s3, %s596_s4 }
   0xf   : > { %178 = vst [vmem:[#allocation1 + $0x10] ss:$2 sm:$0xff] %v667_v0 }
  0x10   : > { %176 = vst [vmem:[#allocation1] ss:$2 sm:$0xff] %v669_v1 }
  0x16   : > { %v181_v2 = vld.sshfl [vmem:[#allocation1 + $0x10] sm:$0xff pattern:$0x75316420]  ;;  %v182_v3 = vld.sshfl [vmem:[#allocation1 + $0x18] sm:$0xff pattern:$0x75316420] }
  0x17   : > { %v188_v4 = vpack.c.bf16 %v182_v3, %v181_v2  ;;  %v179_v5 = vld.sshfl [vmem:[#allocation1] sm:$0xff pattern:$0x75316420]  ;;  %v180_v6 = vld.sshfl [vmem:[#allocation1 + $0x8] sm:$0xff pattern:$0x75316420] }
  0x18   : > { %v187_v7 = vpack.c.bf16 %v180_v6, %v179_v5 }
  0x19   : > { %240 = vrot.lane.b32.xlu1 %v188_v4, %s624_s18  ;;  %190 = vst [vmem:[#allocation2 + $0x8] sm:$0x3] %v188_v4  ;;  %296 = vrot.lane.b32.xlu0 %v188_v4, %s625_s19  ;;  %v194_v8 = vrot.slane %v188_v4, 6 }
  0x1a   : > { %189 = vst [vmem:[#allocation2] sm:$0x33] %v187_v7  ;;  %268 = vrot.lane.b32.xlu2 %v188_v4, %s626_s20  ;;  %v193_v9 = vrot.slane %v187_v7, 6 }
  0x21   : > { %254 = vrot.lane.b32.xlu1 %v194_v8, %s627_s21  ;;  %294 = vrot.lane.b32.xlu0 %v187_v7, %s625_s19 }
  0x22   : > { %266 = vrot.lane.b32.xlu2 %v187_v7, %s626_s20 }
  0x29   : > { %238 = vrot.lane.b32.xlu0 %v187_v7, %s624_s18  ;;  %252 = vrot.lane.b32.xlu1 %v193_v9, %s627_s21 }
  0x2a   : > { %282 = vrot.lane.b32.xlu2 %v194_v8, %s628_s22 }
  0x31   : > { %280 = vrot.lane.b32.xlu0 %v193_v9, %s628_s22  ;;  %197 = vrot.lane.b32.xlu1 %v194_v8, %s629_s23 }
  0x32   : > { %212 = vrot.lane.b32.xlu2 %v188_v4, %s630_s24 }
  0x39   : > { %226 = vrot.lane.b32.xlu0 %v194_v8, %s631_s25  ;;  %195 = vrot.lane.b32.xlu1 %v193_v9, %s629_s23 }
  0x3a   : > { %210 = vrot.lane.b32.xlu2 %v187_v7, %s630_s24 }
  0x41   : > { %224 = vrot.lane.b32.xlu0 %v193_v9, %s631_s25 }
  0x74   : > { %v269_v10 = vpop.permute.xlu2 %268 }
  0x75   : > { %v271_v11 = vrot.slane %v269_v10, 4 }
  0x77   : > { %v275_v12 = vsel %vm273_vm0, %v269_v10, %v271_v11 }
  0x78   : > { %279 = vst [vmem:[#allocation2 + $0x2c] sm:$0x3] %v275_v12 }
  0x7c   : > { %v267_v13 = vpop.permute.xlu2 %266 }
  0x7d   : > { %v270_v14 = vrot.slane %v267_v13, 4 }
  0x7f   : > { %v272_v15 = vsel %vm201_vm1, %v270_v14, %v271_v11 }
  0x80   : > { %v274_v16 = vsel %vm273_vm0, %v267_v13, %v272_v15 }
  0x81   : > { %278 = vst [vmem:[#allocation2 + $0x24] sm:$0x33] %v274_v16 }
  0x84   : > { %v676_v17 = vpop.permute.xlu2 %282 }
  0x85   : > { %v285_v18 = vrot.slane %v676_v17, 4 }
  0x87   : > { %v289_v19 = vsel %vm287_vm2, %v676_v17, %v285_v18 }
  0x88   : > { %293 = vst [vmem:[#allocation2 + $0x2c] sm:$0xc] %v289_v19 }
  0x8b   : > { %v241_v20 = vpop.permute.xlu1 %240  ;;  %v297_v21 = vpop.permute.xlu0 %296 }
  0x8c   : > { %v243_v22 = vrot.slane %v241_v20, 4  ;;  %v299_v23 = vrot.slane %v297_v21, 4  ;;  %v213_v24 = vpop.permute.xlu2 %212 }
  0x8d   : > { %v215_v25 = vrot.slane %v213_v24, 4 }
  0x8e   : > { %v247_v26 = vsel %vm245_vm3, %v241_v20, %v243_v22  ;;  %v303_v27 = vsel %vm301_vm4, %v297_v21, %v299_v23 }
  0x8f   : > { %251 = vst [vmem:[#allocation2 + $0x20] sm:$0x3] %v247_v26  ;;  %v219_v28 = vsel %vm217_vm5, %v213_v24, %v215_v25  ;;  %v595_v51 = vld [vmem:[#allocation2 + $0x28] sm:$0xf0] }
  0x90   : > { %307 = vst [vmem:[#allocation2 + $0x38] sm:$0x3] %v303_v27  ;;  %v308_v27 = vld [vmem:[%s737_s1] sm:$0x3] }
  0x91   : > { %223 = vst [vmem:[#allocation2 + $0x14] sm:$0x3] %v219_v28 }
  0x93   : > { %v255_v29 = vpop.permute.xlu1 %254  ;;  %v295_v30 = vpop.permute.xlu0 %294 }
  0x94   : > { %v257_v31 = vrot.slane %v255_v29, 4  ;;  %v298_v32 = vrot.slane %v295_v30, 4  ;;  %v211_v33 = vpop.permute.xlu2 %210 }
  0x95   : > { %v214_v34 = vrot.slane %v211_v33, 4 }
  0x96   : > { %v261_v35 = vsel %vm259_vm6, %v255_v29, %v257_v31  ;;  %v300_v36 = vsel %vm201_vm1, %v298_v32, %v299_v23 }
  0x97   : > { %265 = vst [vmem:[#allocation2 + $0x20] sm:$0xc] %v261_v35  ;;  %v302_v37 = vsel %vm301_vm4, %v295_v30, %v300_v36  ;;  %v318_v38 = vld [vmem:[#allocation2 + $0x38] sm:$0x3]  ;;  %v216_v39 = vsel %vm201_vm1, %v214_v34, %v215_v25 }
  0x98   : > { %306 = vst [vmem:[#allocation2 + $0x30] sm:$0x33] %v302_v37  ;;  %v343_v40 = vunpack.c.l.b16 %v318_v38  ;;  %v218_v41 = vsel %vm217_vm5, %v211_v33, %v216_v39  ;;  %v412_v34 = vld [vmem:[%s738_s2] sm:$0x7] }
  0x99   : > { %222 = vst [vmem:[#allocation2 + $0xc] sm:$0x33] %v218_v41  ;;  %v416_v35 = vperm.slane %v412_v34, 2  ;;  %v414_v37 = vperm.slane %v412_v34, 0  ;;  %v415_v38 = vperm.slane %v412_v34, 1 }
  0x9a   : > { %v352_v42 = vpack.c.b16 %v343_v40, %v343_v40 }
  0x9b   : > { %v239_v43 = vpop.permute.xlu0 %238  ;;  %v253_v44 = vpop.permute.xlu1 %252 }
  0x9c   : > { %v242_v45 = vrot.slane %v239_v43, 4  ;;  %v256_v46 = vrot.slane %v253_v44, 4  ;;  %v371_v47 = vsel %vm363_vm7, %v352_v42, 0 }
  0x9d   : > { %404 = vmatpush.bf16.msra.mxu2 %v371_v47 }
  0x9e   : > { %v244_v48 = vsel %vm201_vm1, %v242_v45, %v243_v22  ;;  %v258_v49 = vsel %vm201_vm1, %v256_v46, %v257_v31  ;;  %v582_v50 = vld [vmem:[#allocation2 + $0x20] sm:$0xf] }
  0x9f   : > { %v246_v52 = vsel %vm245_vm3, %v239_v43, %v244_v48  ;;  %v260_v53 = vsel %vm259_vm6, %v253_v44, %v258_v49  ;;  %v583_v54 = vor.u32 %v595_v51, %v582_v50  ;;  %v317_v55 = vld [vmem:[#allocation2 + $0x30] sm:$0x33] }
  0xa0   : > { %250 = vst [vmem:[#allocation2 + $0x18] sm:$0x33] %v246_v52  ;;  %v341_v56 = vunpack.c.l.b16 %v317_v55  ;;  %v342_v57 = vunpack.c.h.b16 %v317_v55 }
  0xa1   : > { %264 = vst [vmem:[#allocation2 + $0x18] sm:$0xcc] %v260_v53  ;;  %405 = vmatpush.bf16.msra.mxu2 %v583_v54 }
  0xa2   : > { %v350_v58 = vpack.c.b16 %v341_v56, %v341_v56  ;;  %v351_v59 = vpack.c.b16 %v342_v57, %v342_v57 }
  0xa3   : > { %v281_v60 = vpop.permute.xlu0 %280  ;;  %v198_v61 = vpop.permute.xlu1 %197 }
  0xa4   : > { %v284_v62 = vrot.slane %v281_v60, 4  ;;  %v200_v63 = vrot.slane %v198_v61, 4  ;;  %v365_v2 = vsel %vm363_vm7, %v350_v58, 0  ;;  %v368_v3 = vsel %vm363_vm7, %v351_v59, 0 }
  0xa5   : > { %378 = vmatpush.bf16.msra.mxu0 %v365_v2  ;;  %391 = vmatpush.bf16.msra.mxu1 %v368_v3 }
  0xa6   : > { %v286_v4 = vsel %vm201_vm1, %v284_v62, %v285_v18  ;;  %v205_v5 = vsel %vm203_vm8, %v198_v61, %v200_v63 }
  0xa7   : > { %v288_v6 = vsel %vm287_vm2, %v281_v60, %v286_v4  ;;  %209 = vst [vmem:[#allocation2 + $0x8] sm:$0xc] %v205_v5 }
  0xa8   : > { %292 = vst [vmem:[#allocation2 + $0x24] sm:$0xcc] %v288_v6  ;;  %v574_v13 = vld [vmem:[#allocation2 + $0x18] sm:$0xf]  ;;  %v593_v14 = vld [vmem:[#allocation2 + $0x1c] sm:$0xf] }
  0xab   : > { %v227_v7 = vpop.permute.xlu0 %226  ;;  %v196_v8 = vpop.permute.xlu1 %195 }
  0xac   : > { %v229_v9 = vrot.slane %v227_v7, 4  ;;  %v199_v10 = vrot.slane %v196_v8, 4 }
  0xae   : > { %v233_v11 = vsel %vm231_vm9, %v227_v7, %v229_v9  ;;  %v202_v12 = vsel %vm201_vm1, %v199_v10, %v200_v63  ;;  %v570_v23 = vld [vmem:[#allocation2 + $0x8] sm:$0xf] }
  0xaf   : > { %237 = vst [vmem:[#allocation2 + $0x14] sm:$0xc] %v233_v11  ;;  %v204_v15 = vsel %vm203_vm8, %v196_v8, %v202_v12  ;;  %v594_v16 = vld [vmem:[#allocation2 + $0x20] sm:$0xf0]  ;;  %v576_v17 = vld [vmem:[#allocation2 + $0x24] sm:$0xf0] }
  0xb0   : > { %208 = vst [vmem:[#allocation2] sm:$0xcc] %v204_v15  ;;  %v575_v18 = vor.u32 %v594_v16, %v574_v13  ;;  %v579_v19 = vor.u32 %v593_v14, %v576_v17 }
  0xb2   : > { %379 = vmatpush.bf16.msra.mxu0 %v575_v18  ;;  %392 = vmatpush.bf16.msra.mxu1 %v579_v19 }
  0xb3   : > { %v225_v20 = vpop.permute.xlu0 %224 }
  0xb4   : > { %v228_v21 = vrot.slane %v225_v20, 4 }
  0xb6   : > { %v230_v22 = vsel %vm201_vm1, %v228_v21, %v229_v9  ;;  %v592_v24 = vld [vmem:[#allocation2 + $0x10] sm:$0xf0] }
  0xb7   : > { %v232_v25 = vsel %vm231_vm9, %v225_v20, %v230_v22  ;;  %v571_v26 = vor.u32 %v592_v24, %v570_v23  ;;  %v562_v28 = vld [vmem:[#allocation2] sm:$0xf]  ;;  %v590_v30 = vld [vmem:[#allocation2 + $0x4] sm:$0xf] }
  0xb8   : > { %236 = vst [vmem:[#allocation2 + $0xc] sm:$0xcc] %v232_v25 }
  0xb9   : > { %406 = vmatpush.bf16.msra.mxu2 %v571_v26 }
  0xbc   : > { %586 = vmatmul.msk.bf16.vlgmr.msra.gmra.mxu2 %vm359_vm10, %v308_v27 }
  0xbf   : > { %v591_v29 = vld [vmem:[#allocation2 + $0x8] sm:$0xf0]  ;;  %v564_v31 = vld [vmem:[#allocation2 + $0xc] sm:$0xf0] }
  0xc0   : > { %v563_v32 = vor.u32 %v591_v29, %v562_v28  ;;  %v567_v33 = vor.u32 %v590_v30, %v564_v31 }
  0xc2   : > { %380 = vmatpush.bf16.msra.mxu0 %v563_v32  ;;  %393 = vmatpush.bf16.msra.mxu1 %v567_v33 }
  0xc5   : > { %584 = vmatmul.msk.bf16.vlgmr.msra.gmra.mxu0 %vm359_vm10, %v308_v27  ;;  %585 = vmatmul.msk.bf16.vlgmr.msra.gmra.mxu1 %vm359_vm10, %v308_v27 }
 0x13f   : > { %v408_v36 = vpop.f32.mrf.mxu2 }
 0x140   : > { %v422_v39 = vmul.f32 %v416_v35, %v408_v36 }
 0x142   : > { %v382_v40 = vpop.f32.mrf.mxu0  ;;  %v395_v41 = vpop.f32.mrf.mxu1  ;;  %v434_v42 = vmul.f32 %v422_v39, %v422_v39  ;;  %v427_v45 = vsel %vm201_vm1, %v422_v39, 0.0 }
 0x143   : > { %v420_v43 = vmul.f32 %v414_v37, %v382_v40  ;;  %v421_v44 = vmul.f32 %v415_v38, %v395_v41 }
 0x144   : > { %v438_v54 = vsel %vm201_vm1, %v434_v42, 0.0 }
 0x145   : > { %v424_v46 = vsel %vm201_vm1, %v420_v43, 0.0  ;;  %v432_v47 = vmul.f32 %v420_v43, %v420_v43  ;;  %v425_v48 = vsel %vm201_vm1, %v421_v44, 0.0  ;;  %v433_v49 = vmul.f32 %v421_v44, %v421_v44 }
 0x146   : > { %v426_v50 = vadd.f32 %v425_v48, %v424_v46 }
 0x147   : > { %v410_v51 = vpop.f32.mrf.mxu2  ;;  %v435_v52 = vsel %vm201_vm1, %v432_v47, 0.0  ;;  %v436_v53 = vsel %vm201_vm1, %v433_v49, 0.0 }
 0x148   : > { %v428_v55 = vadd.f32 %v427_v45, %v426_v50  ;;  %v437_v56 = vadd.f32 %v436_v53, %v435_v52 }
 0x14a   : > { %v384_v57 = vpop.f32.mrf.mxu0  ;;  %429 = vadd.xlane.f32.xlu1 %v428_v55  ;;  %v397_v58 = vpop.f32.mrf.mxu1  ;;  %v439_v59 = vadd.f32 %v438_v54, %v437_v56 }
 0x14c   : > { %440 = vadd.xlane.f32.xlu2 %v439_v59 }
 0x1bd   : > { %v430_v60 = vpop.xlane.xlu1 %429 }
 0x1be   : > { %v431_v61 = vmul.f32 0.00390625, %v430_v60 }
 0x1bf   : > { %v441_v62 = vpop.xlane.xlu2 %440 }
 0x1c0   : > { %v442_v63 = vmul.f32 0.00390625, %v441_v62  ;;  %v443_v2 = vmul.f32 %v431_v61, %v431_v61  ;;  %v446_v11 = vsub.f32 %v395_v41, %v431_v61  ;;  %v445_v13 = vsub.f32 %v382_v40, %v431_v61 }
 0x1c1   : > { %v447_v18 = vsub.f32 %v408_v36, %v431_v61 }
 0x1c2   : > { %v444_v3 = vsub.f32 %v442_v63, %v443_v2 }
 0x1c4   : > { %v448_v4 = vadd.f32 1e-05, %v444_v3 }
 0x1c6   : > { %614 = vrsqrt.f32 %v448_v4  ;;  %vm455_vm12 = vweird.f32 %v448_v4 }
 0x1cc   : > { %v615_v5 = vpop.eup %614 }
 0x1cd   : > { %v450_v6 = vmul.f32 %v615_v5, %v448_v4  ;;  %vm456_vm11 = vweird.f32 %v615_v5 }
 0x1ce   : > { %vm457_vm13 = vmor %vm455_vm12, %vm456_vm11 }
 0x1cf   : > { %v451_v7 = vmul.f32 %v615_v5, %v450_v6 }
 0x1d1   : > { %v452_v8 = vmul.f32 0.5, %v451_v7 }
 0x1d3   : > { %v453_v9 = vsub.f32 1.5, %v452_v8 }
 0x1d5   : > { %v454_v10 = vmul.f32 %v615_v5, %v453_v9 }
 0x1d7   : > { %v458_v12 = vsel %vm457_vm13, %v615_v5, %v454_v10 }
 0x1d8   : > { %v460_v14 = vmul.f32 %v458_v12, %v446_v11  ;;  %v459_v15 = vmul.f32 %v458_v12, %v445_v13  ;;  %v461_v19 = vmul.f32 %v458_v12, %v447_v18 }
 0x1da   : > { %v465_v16 = vrot.slane %v460_v14, 4 }
 0x1dc   : > { %v466_v17 = vsel %vm201_vm1, %v459_v15, %v465_v16 }
 0x1dd   : > { %467 = vrot.lane.b32.xlu0 %v466_v17, %s632_s30 }
 0x1e5   : > { %469 = vrot.lane.b32.xlu0 %v461_v19, %s632_s30 }
 0x24f   : > { %v468_v20 = vpop.permute.xlu0 %467 }
 0x250   : > { %v471_v21 = vrot.slane %v468_v20, 4 }
 0x252   : > { %v474_v22 = vsel %vm473_vm14, %v471_v21, %v468_v20 }
 0x253   : > { %v479_v23 = vadd.f32 %v474_v22, %v669_v1 }
 0x255   : > { %483 = vrot.lane.b32.xlu0 %v479_v23, %s624_s18 }
 0x257   : > { %v470_v24 = vpop.permute.xlu0 %469 }
 0x258   : > { %v472_v25 = vrot.slane %v470_v24, 4 }
 0x25a   : > { %v475_v26 = vsel %vm201_vm1, %v471_v21, %v472_v25 }
 0x25b   : > { %v476_v27 = vsel %vm473_vm14, %v475_v26, %v470_v24 }
 0x25c   : > { %v480_v28 = vadd.f32 %v476_v27, %v667_v0 }
 0x25e   : > { %485 = vrot.lane.b32.xlu0 %v480_v28, %s624_s18 }
 0x2c7   : > { %v484_v29 = vpop.permute.xlu0 %483 }
 0x2c8   : > { %v487_v31 = vrot.slane %v484_v29, 4 }
 0x2d0   : > { %v486_v30 = vpop.permute.xlu0 %485 }
 0x2d1   : > { %v488_v1 = vrot.slane %v486_v30, 4 }
 0x2d3   : > { %v489_v32 = vsel %vm201_vm1, %v487_v31, %v488_v1  ;;  %v492_v33 = vsel %vm245_vm3, %v486_v30, %v488_v1 }
 0x2d4   : > { %v491_v34 = vsel %vm245_vm3, %v484_v29, %v489_v32  ;;  %496 = vst [vmem:[%s170_s7 + $0x8] sm:$0xf] %v492_v33 }
 0x2d5   : > { %495 = vst [vmem:[%s170_s7] sm:$0xff] %v491_v34 }
 0x2d6 PF: > { %s13_s12 = sadd.s32 1, %s622_s12  }
 0x2d7   : > { %p10_p4 = scmp.ge.s32.totalorder %s13_s12, 4  }
 0x2d9   :  { %12 = sbr.rel (!%p10_p4) target bundleno = 1 (0x1), region = 63 }

</bundles_post_ra>
